<compile_context>
chip_gen: v7x
topology: tpu7x:2x2x1
jax: 0.10.0
libtpu: 0.0.40
codegen_flags: <defaults>
</compile_context>

<pallas_src>
import jax
import jax.numpy as jnp
from jax.experimental import pallas as pl
from jax.experimental.pallas import tpu as pltpu


def _round_up(n, m):
    return ((n + m - 1) // m) * m


def cvae_kernel(x_ref, w_enc_ref, b_enc_ref, w_heads_ref, b_heads_ref,
                w_dec_ref, b_dec_ref, dec_ref, heads_ref):
    # x tile: (tb, Fp).  Cast to the weight dtype so bf16 weights hit the
    # bf16 MXU path; accumulation is f32 via preferred_element_type.
    x = x_ref[...].astype(w_enc_ref.dtype)

    # encoder (+ cond passthrough columns): h = relu(x @ We + be)
    h = jnp.dot(x, w_enc_ref[...], preferred_element_type=jnp.float32)
    h = jnp.maximum(h + b_enc_ref[...], 0.0)
    hc = h.astype(w_heads_ref.dtype)

    # fused latent heads: one wide matmul, layout [mu | logstd | pad]
    heads_ref[...] = (
        jnp.dot(hc, w_heads_ref[...], preferred_element_type=jnp.float32)
        + b_heads_ref[...])

    # folded decoder (z = mu path + cond path baked into one weight):
    #   decoded = h @ (w_mu@w_dec_z) + cond @ w_dec_c + (b_mu@w_dec_z + b_dec)
    dec_ref[...] = (
        jnp.dot(hc, w_dec_ref[...], preferred_element_type=jnp.float32)
        + b_dec_ref[...])


def prepare_kernel_params(p, condition_dim, *, weight_dtype=jnp.float32):
    """Offline (host-side) fusion / folding / padding of raw CVAE parameters.

    Raw params use pre-transposed (in_features, out_features) weights.
    """
    z_dim = p["w_mu"].shape[1]
    h_dim = p["w_enc"].shape[1]
    F = p["w_enc"].shape[0]            # input_dim + condition_dim
    input_dim = p["w_dec_z"].shape[1]
    cd = condition_dim

    Fp = _round_up(F, 128)             # padded encoder K axis (x lane width)
    He = _round_up(h_dim + 2 * cd, 128)  # extended hidden width (+/- cond cols)
    hp = _round_up(2 * z_dim, 128)     # fused heads output width (lane-dense)
    dp = _round_up(input_dim, 256)     # decoder output width (MXU-256 aligned)

    # --- encoder: append +/- cond passthrough columns, zero-pad K and N ---
    w_enc = jnp.zeros((Fp, He), jnp.float32)
    w_enc = w_enc.at[:F, :h_dim].set(p["w_enc"])
    cond_rows = input_dim + jnp.arange(cd)          # x[:, -cd:] rows
    w_enc = w_enc.at[cond_rows, h_dim + jnp.arange(cd)].set(1.0)
    w_enc = w_enc.at[cond_rows, h_dim + cd + jnp.arange(cd)].set(-1.0)
    b_enc = jnp.zeros((1, He), jnp.float32).at[:, :h_dim].set(p["b_enc"])

    # --- fused heads: [mu | logstd], passthrough/pad rows are zero ---
    w_heads = jnp.zeros((He, hp), jnp.float32)
    w_heads = w_heads.at[:h_dim, :z_dim].set(p["w_mu"])
    w_heads = w_heads.at[:h_dim, z_dim:2 * z_dim].set(p["w_ls"])
    b_heads = jnp.zeros((1, hp), jnp.float32)
    b_heads = b_heads.at[:, :z_dim].set(p["b_mu"])
    b_heads = b_heads.at[:, z_dim:2 * z_dim].set(p["b_ls"])

    # --- folded decoder: z = mu path + (+/-) cond rows, zero-padded ---
    w_dec_core = p["w_mu"] @ p["w_dec_z"]                 # (h_dim, input_dim)
    b_dec_core = p["b_mu"] @ p["w_dec_z"] + p["b_dec"]    # (1, input_dim)
    w_dec = jnp.zeros((He, dp), jnp.float32)
    w_dec = w_dec.at[:h_dim, :input_dim].set(w_dec_core)
    w_dec = w_dec.at[h_dim:h_dim + cd, :input_dim].set(p["w_dec_c"])
    w_dec = w_dec.at[h_dim + cd:h_dim + 2 * cd, :input_dim].set(-p["w_dec_c"])
    b_dec = jnp.zeros((1, dp), jnp.float32).at[:, :input_dim].set(b_dec_core)

    return {
        "w_enc": w_enc.astype(weight_dtype), "b_enc": b_enc,
        "w_heads": w_heads.astype(weight_dtype), "b_heads": b_heads,
        "w_dec": w_dec.astype(weight_dtype), "b_dec": b_dec,
        "z_dim": z_dim, "input_dim": input_dim, "condition_dim": cd,
        "F": F, "Fp": Fp, "He": He, "hp": hp, "dp": dp,
    }


def cvae_forward(x, kp, *, tb=None, vmem_budget_bytes=40 << 20):
    """Returns (decoded, mu, logstd) — same semantics as CVAE.forward (eval)."""
    B, F = x.shape
    assert F == kp["F"]
    Fp, He, hp, dp = kp["Fp"], kp["He"], kp["hp"], kp["dp"]
    z_dim, input_dim = kp["z_dim"], kp["input_dim"]

    # host-side K-axis padding of x (zero w_enc rows beyond F contribute 0)
    if Fp != F:
        x = jnp.pad(x, ((0, 0), (0, Fp - F)))

    weight_names = ("w_enc", "b_enc", "w_heads", "b_heads", "w_dec", "b_dec")
    weight_bytes = sum(int(kp[k].size) * kp[k].dtype.itemsize
                       for k in weight_names)
    x_row_bytes = Fp * x.dtype.itemsize
    out_row_bytes = (hp + dp) * 4       # f32 outputs

    if tb is None:
        # aim for >=4 grid steps (v7x megacore + DMA/compute overlap), cap 256
        tb = min(256, max(8, _round_up(pl.cdiv(B, 4), 8)))
        # shrink until double-buffered activation tiles + resident weights fit
        while tb > 8 and (weight_bytes + 2 * tb * (x_row_bytes + out_row_bytes)
                          > vmem_budget_bytes):
            tb //= 2
        tb = max(8, _round_up(tb, 8))
    tb = min(tb, _round_up(B, 8))

    grid = (pl.cdiv(B, tb),)

    # explicit scoped-VMEM limit: resident weights + double-buffered tiles
    vmem_need = weight_bytes + 2 * tb * (x_row_bytes + out_row_bytes)
    vmem_limit = int(min(max(vmem_need + (vmem_need >> 2) + (4 << 20),
                             32 << 20), 60 << 20))

    flops = 2 * B * Fp * He + 2 * B * He * (hp + dp)
    bytes_accessed = B * (x_row_bytes + out_row_bytes) + weight_bytes
    cost = pl.CostEstimate(flops=int(flops), transcendentals=0,
                           bytes_accessed=int(bytes_accessed))

    def batch_spec(cols):
        return pl.BlockSpec((tb, cols), lambda i: (i, 0))

    def resident(a, single_buffer):
        # full array, same block every grid step -> DMA'd once, VMEM-resident
        if single_buffer:
            return pl.BlockSpec(a.shape, lambda i: (0, 0),
                                pipeline_mode=pl.Buffered(1))
        return pl.BlockSpec(a.shape, lambda i: (0, 0))

    def build(single_buffer):
        return pl.pallas_call(
            cvae_kernel,
            out_shape=(
                jax.ShapeDtypeStruct((B, dp), jnp.float32),
                jax.ShapeDtypeStruct((B, hp), jnp.float32),
            ),
            grid=grid,
            in_specs=[
                batch_spec(Fp),
                resident(kp["w_enc"], single_buffer),
                resident(kp["b_enc"], single_buffer),
                resident(kp["w_heads"], single_buffer),
                resident(kp["b_heads"], single_buffer),
                resident(kp["w_dec"], single_buffer),
                resident(kp["b_dec"], single_buffer),
            ],
            out_specs=(batch_spec(dp), batch_spec(hp)),
            compiler_params=pltpu.CompilerParams(
                dimension_semantics=("parallel",),
                vmem_limit_bytes=vmem_limit),
            cost_estimate=cost,
        )

    args = (x, kp["w_enc"], kp["b_enc"], kp["w_heads"], kp["b_heads"],
            kp["w_dec"], kp["b_dec"])
    try:
        dec_pad, heads = build(True)(*args)
        dec_pad, heads = jax.block_until_ready((dec_pad, heads))
    except Exception:
        # TODO(synk): drop fallback once pl.Buffered(1) single-buffering is
        # universally supported by the installed Pallas/Mosaic.
        dec_pad, heads = build(False)(*args)

    decoded = dec_pad[:, :input_dim]
    mu = heads[:, :z_dim]
    logstd = heads[:, z_dim:2 * z_dim]
    return decoded, mu, logstd


def init_params(key, input_dim, condition_dim, h_dim, z_dim):
    """Deterministic init mimicking torch.nn.Linear default (+-1/sqrt(fan_in)).
    Weights stored pre-transposed as (in_features, out_features)."""
    ks = jax.random.split(key, 8)

    def lin(kw, kb, fan_in, fan_out):
        bound = 1.0 / jnp.sqrt(fan_in)
        w = jax.random.uniform(kw, (fan_in, fan_out), jnp.float32, -bound, bound)
        b = jax.random.uniform(kb, (1, fan_out), jnp.float32, -bound, bound)
        return w, b

    w_enc, b_enc = lin(ks[0], ks[1], input_dim + condition_dim, h_dim)
    w_mu, b_mu = lin(ks[2], ks[3], h_dim, z_dim)
    w_ls, b_ls = lin(ks[4], ks[5], h_dim, z_dim)
    w_dec, b_dec = lin(ks[6], ks[7], z_dim + condition_dim, input_dim)
    return {
        "w_enc": w_enc, "b_enc": b_enc,
        "w_mu": w_mu, "b_mu": b_mu,
        "w_ls": w_ls, "b_ls": b_ls,
        "w_dec_z": w_dec[:z_dim, :], "w_dec_c": w_dec[z_dim:, :],
        "b_dec": b_dec,
    }


def cvae_forward_ref(x, p, condition_dim):
    """Pure-JAX reference of the original (unfused) forward, eval mode."""
    cond = x[:, -condition_dim:]
    h = jnp.maximum(x @ p["w_enc"] + p["b_enc"], 0.0)
    mu = h @ p["w_mu"] + p["b_mu"]
    logstd = h @ p["w_ls"] + p["b_ls"]
    z = mu                       # eval mode: reparametrize returns mu
    dec = z @ p["w_dec_z"] + cond @ p["w_dec_c"] + p["b_dec"]
    return dec, mu, logstd


if __name__ == "__main__":
    input_dim, condition_dim, h_dim, z_dim = 16, 2, 32, 8
    batch = 8

    key = jax.random.PRNGKey(0)
    kx, kp_key = jax.random.split(key)
    x = jax.random.normal(kx, (batch, input_dim + condition_dim), jnp.float32)
    params = init_params(kp_key, input_dim, condition_dim, h_dim, z_dim)

    dec_ref, mu_ref, ls_ref = cvae_forward_ref(x, params, condition_dim)

    # f32 weights: tight tolerance vs. the unfused reference
    kparams = prepare_kernel_params(params, condition_dim)
    decoded, mu, logstd = cvae_forward(x, kparams)
    decoded, mu, logstd = jax.block_until_ready((decoded, mu, logstd))
    assert jnp.allclose(decoded, dec_ref, atol=1e-4, rtol=1e-4)
    assert jnp.allclose(mu, mu_ref, atol=1e-4, rtol=1e-4)
    assert jnp.allclose(logstd, ls_ref, atol=1e-4, rtol=1e-4)

    # bf16 weights (production path): same structure, loose tolerance for
    # expected bf16 quantization drift.
    kparams_bf16 = prepare_kernel_params(params, condition_dim,
                                         weight_dtype=jnp.bfloat16)
    dec_bf, mu_bf, ls_bf = cvae_forward(x, kparams_bf16)
    dec_bf, mu_bf, ls_bf = jax.block_until_ready((dec_bf, mu_bf, ls_bf))
    assert float(jnp.max(jnp.abs(dec_bf - dec_ref))) < 0.3
    assert float(jnp.max(jnp.abs(mu_bf - mu_ref))) < 0.3
    assert float(jnp.max(jnp.abs(ls_bf - ls_ref))) < 0.3

    print("KERNEL_OK")
</pallas_src>

<mosaic_0001>
module attributes {stable_mosaic.version = 11 : i64} {
  func.func @cvae_kernel(%arg0: i32, %arg1: memref<8x128xf32, #tpu.memory_space<vmem>>, %arg2: memref<128x128xf32, #tpu.memory_space<vmem>>, %arg3: memref<1x128xf32, #tpu.memory_space<vmem>>, %arg4: memref<128x128xf32, #tpu.memory_space<vmem>>, %arg5: memref<1x128xf32, #tpu.memory_space<vmem>>, %arg6: memref<128x256xf32, #tpu.memory_space<vmem>>, %arg7: memref<1x256xf32, #tpu.memory_space<vmem>>, %arg8: memref<8x256xf32, #tpu.memory_space<vmem>>, %arg9: memref<8x128xf32, #tpu.memory_space<vmem>>) attributes {dimension_semantics = [#tpu.dimension_semantics<parallel>], iteration_bounds = array<i64: 1>, scalar_prefetch = 0 : i64, scratch_operands = 0 : i64, tpu.core_type = #tpu.core_type<tc>, window_params = [{transform_indices = @transform_0, window_bounds = array<i64: 8, 128>}, {pipeline_mode = #tpu.pipeline_mode<synchronous>, transform_indices = @transform_1, window_bounds = array<i64: 128, 128>}, {pipeline_mode = #tpu.pipeline_mode<synchronous>, transform_indices = @transform_2, window_bounds = array<i64: 1, 128>}, {pipeline_mode = #tpu.pipeline_mode<synchronous>, transform_indices = @transform_3, window_bounds = array<i64: 128, 128>}, {pipeline_mode = #tpu.pipeline_mode<synchronous>, transform_indices = @transform_4, window_bounds = array<i64: 1, 128>}, {pipeline_mode = #tpu.pipeline_mode<synchronous>, transform_indices = @transform_5, window_bounds = array<i64: 128, 256>}, {pipeline_mode = #tpu.pipeline_mode<synchronous>, transform_indices = @transform_6, window_bounds = array<i64: 1, 256>}, {transform_indices = @transform_7, window_bounds = array<i64: 8, 256>}, {transform_indices = @transform_8, window_bounds = array<i64: 8, 128>}]} {
    %c0 = arith.constant 0 : index
    %c0_0 = arith.constant 0 : index
    %0 = vector.load %arg1[%c0, %c0_0] : memref<8x128xf32, #tpu.memory_space<vmem>>, vector<8x128xf32>
    %c0_1 = arith.constant 0 : index
    %c0_2 = arith.constant 0 : index
    %1 = vector.load %arg2[%c0_1, %c0_2] : memref<128x128xf32, #tpu.memory_space<vmem>>, vector<128x128xf32>
    %cst = arith.constant dense<0.000000e+00> : vector<8x128xf32>
    %2 = tpu.matmul %0, %1, %cst {dimension_numbers = #tpu.dot_dimension_numbers<[1], [0], [0], [1], [0, 0, 1, 1], [], []>} : vector<8x128xf32>, vector<128x128xf32>, vector<8x128xf32> -> vector<8x128xf32>
    %c0_3 = arith.constant 0 : index
    %c0_4 = arith.constant 0 : index
    %3 = vector.load %arg3[%c0_3, %c0_4] : memref<1x128xf32, #tpu.memory_space<vmem>>, vector<1x128xf32>
    %4 = vector.broadcast %3 : vector<1x128xf32> to vector<8x128xf32>
    %5 = arith.addf %2, %4 : vector<8x128xf32>
    %cst_5 = arith.constant 0.000000e+00 : f32
    %6 = vector.broadcast %cst_5 : f32 to vector<8x128xf32>
    %7 = arith.maximumf %5, %6 : vector<8x128xf32>
    %c0_6 = arith.constant 0 : index
    %c0_7 = arith.constant 0 : index
    %8 = vector.load %arg4[%c0_6, %c0_7] : memref<128x128xf32, #tpu.memory_space<vmem>>, vector<128x128xf32>
    %cst_8 = arith.constant dense<0.000000e+00> : vector<8x128xf32>
    %9 = tpu.matmul %7, %8, %cst_8 {dimension_numbers = #tpu.dot_dimension_numbers<[1], [0], [0], [1], [0, 0, 1, 1], [], []>} : vector<8x128xf32>, vector<128x128xf32>, vector<8x128xf32> -> vector<8x128xf32>
    %c0_9 = arith.constant 0 : index
    %c0_10 = arith.constant 0 : index
    %10 = vector.load %arg5[%c0_9, %c0_10] : memref<1x128xf32, #tpu.memory_space<vmem>>, vector<1x128xf32>
    %11 = vector.broadcast %10 : vector<1x128xf32> to vector<8x128xf32>
    %12 = arith.addf %9, %11 : vector<8x128xf32>
    %c0_11 = arith.constant 0 : index
    %c0_12 = arith.constant 0 : index
    %13 = vector.load %arg9[%c0_11, %c0_12] : memref<8x128xf32, #tpu.memory_space<vmem>>, vector<8x128xf32>
    tpu.vector_store %arg9[%c0_11, %c0_12], %12 {strides = array<i32>} : memref<8x128xf32, #tpu.memory_space<vmem>>, vector<8x128xf32>,
    %c0_13 = arith.constant 0 : index
    %c0_14 = arith.constant 0 : index
    %14 = vector.load %arg6[%c0_13, %c0_14] : memref<128x256xf32, #tpu.memory_space<vmem>>, vector<128x256xf32>
    %cst_15 = arith.constant dense<0.000000e+00> : vector<8x256xf32>
    %15 = tpu.matmul %7, %14, %cst_15 {dimension_numbers = #tpu.dot_dimension_numbers<[1], [0], [0], [1], [0, 0, 1, 1], [], []>} : vector<8x128xf32>, vector<128x256xf32>, vector<8x256xf32> -> vector<8x256xf32>
    %c0_16 = arith.constant 0 : index
    %c0_17 = arith.constant 0 : index
    %16 = vector.load %arg7[%c0_16, %c0_17] : memref<1x256xf32, #tpu.memory_space<vmem>>, vector<1x256xf32>
    %17 = vector.broadcast %16 : vector<1x256xf32> to vector<8x256xf32>
    %18 = arith.addf %15, %17 : vector<8x256xf32>
    %c0_18 = arith.constant 0 : index
    %c0_19 = arith.constant 0 : index
    %19 = vector.load %arg8[%c0_18, %c0_19] : memref<8x256xf32, #tpu.memory_space<vmem>>, vector<8x256xf32>
    tpu.vector_store %arg8[%c0_18, %c0_19], %18 {strides = array<i32>} : memref<8x256xf32, #tpu.memory_space<vmem>>, vector<8x256xf32>,
    return
  }
  func.func @transform_0(%arg0: i32) -> (i32, i32) {
    %c0_i32 = arith.constant 0 : i32
    %c0_i32_0 = arith.constant 0 : i32
    return %arg0, %c0_i32 : i32, i32
  }
  func.func @transform_1(%arg0: i32) -> (i32, i32) {
    %c0_i32 = arith.constant 0 : i32
    %c0_i32_0 = arith.constant 0 : i32
    %c0_i32_1 = arith.constant 0 : i32
    return %c0_i32, %c0_i32_0 : i32, i32
  }
  func.func @transform_2(%arg0: i32) -> (i32, i32) {
    %c0_i32 = arith.constant 0 : i32
    %c0_i32_0 = arith.constant 0 : i32
    %c0_i32_1 = arith.constant 0 : i32
    return %c0_i32, %c0_i32_0 : i32, i32
  }
  func.func @transform_3(%arg0: i32) -> (i32, i32) {
    %c0_i32 = arith.constant 0 : i32
    %c0_i32_0 = arith.constant 0 : i32
    %c0_i32_1 = arith.constant 0 : i32
    return %c0_i32, %c0_i32_0 : i32, i32
  }
  func.func @transform_4(%arg0: i32) -> (i32, i32) {
    %c0_i32 = arith.constant 0 : i32
    %c0_i32_0 = arith.constant 0 : i32
    %c0_i32_1 = arith.constant 0 : i32
    return %c0_i32, %c0_i32_0 : i32, i32
  }
  func.func @transform_5(%arg0: i32) -> (i32, i32) {
    %c0_i32 = arith.constant 0 : i32
    %c0_i32_0 = arith.constant 0 : i32
    %c0_i32_1 = arith.constant 0 : i32
    return %c0_i32, %c0_i32_0 : i32, i32
  }
  func.func @transform_6(%arg0: i32) -> (i32, i32) {
    %c0_i32 = arith.constant 0 : i32
    %c0_i32_0 = arith.constant 0 : i32
    %c0_i32_1 = arith.constant 0 : i32
    return %c0_i32, %c0_i32_0 : i32, i32
  }
  func.func @transform_7(%arg0: i32) -> (i32, i32) {
    %c0_i32 = arith.constant 0 : i32
    %c0_i32_0 = arith.constant 0 : i32
    return %arg0, %c0_i32 : i32, i32
  }
  func.func @transform_8(%arg0: i32) -> (i32, i32) {
    %c0_i32 = arith.constant 0 : i32
    %c0_i32_0 = arith.constant 0 : i32
    return %arg0, %c0_i32 : i32, i32
  }
}

module attributes {stable_mosaic.version = 11 : i64} {
  func.func @cvae_kernel(%arg0: i32, %arg1: memref<8x128xf32, #tpu.memory_space<vmem>>, %arg2: memref<128x128xf32, #tpu.memory_space<vmem>>, %arg3: memref<1x128xf32, #tpu.memory_space<vmem>>, %arg4: memref<128x128xf32, #tpu.memory_space<vmem>>, %arg5: memref<1x128xf32, #tpu.memory_space<vmem>>, %arg6: memref<128x256xf32, #tpu.memory_space<vmem>>, %arg7: memref<1x256xf32, #tpu.memory_space<vmem>>, %arg8: memref<8x256xf32, #tpu.memory_space<vmem>>, %arg9: memref<8x128xf32, #tpu.memory_space<vmem>>) attributes {dimension_semantics = [#tpu.dimension_semantics<parallel>], iteration_bounds = array<i64: 1>, scalar_prefetch = 0 : i64, scratch_operands = 0 : i64, tpu.core_type = #tpu.core_type<tc>, window_params = [{transform_indices = @transform_0, window_bounds = array<i64: 8, 128>}, {pipeline_mode = #tpu.pipeline_mode<synchronous>, transform_indices = @transform_1, window_bounds = array<i64: 128, 128>}, {pipeline_mode = #tpu.pipeline_mode<synchronous>, transform_indices = @transform_2, window_bounds = array<i64: 1, 128>}, {pipeline_mode = #tpu.pipeline_mode<synchronous>, transform_indices = @transform_3, window_bounds = array<i64: 128, 128>}, {pipeline_mode = #tpu.pipeline_mode<synchronous>, transform_indices = @transform_4, window_bounds = array<i64: 1, 128>}, {pipeline_mode = #tpu.pipeline_mode<synchronous>, transform_indices = @transform_5, window_bounds = array<i64: 128, 256>}, {pipeline_mode = #tpu.pipeline_mode<synchronous>, transform_indices = @transform_6, window_bounds = array<i64: 1, 256>}, {transform_indices = @transform_7, window_bounds = array<i64: 8, 256>}, {transform_indices = @transform_8, window_bounds = array<i64: 8, 128>}]} {
    %c0 = arith.constant 0 : index
    %c0_0 = arith.constant 0 : index
    %0 = vector.load %arg1[%c0, %c0_0] : memref<8x128xf32, #tpu.memory_space<vmem>>, vector<8x128xf32>
    %c0_1 = arith.constant 0 : index
    %c0_2 = arith.constant 0 : index
    %1 = vector.load %arg2[%c0_1, %c0_2] : memref<128x128xf32, #tpu.memory_space<vmem>>, vector<128x128xf32>
    %cst = arith.constant dense<0.000000e+00> : vector<8x128xf32>
    %2 = tpu.matmul %0, %1, %cst {dimension_numbers = #tpu.dot_dimension_numbers<[1], [0], [0], [1], [0, 0, 1, 1], [], []>} : vector<8x128xf32>, vector<128x128xf32>, vector<8x128xf32> -> vector<8x128xf32>
    %c0_3 = arith.constant 0 : index
    %c0_4 = arith.constant 0 : index
    %3 = vector.load %arg3[%c0_3, %c0_4] : memref<1x128xf32, #tpu.memory_space<vmem>>, vector<1x128xf32>
    %4 = vector.broadcast %3 : vector<1x128xf32> to vector<8x128xf32>
    %5 = arith.addf %2, %4 : vector<8x128xf32>
    %cst_5 = arith.constant 0.000000e+00 : f32
    %6 = vector.broadcast %cst_5 : f32 to vector<8x128xf32>
    %7 = arith.maximumf %5, %6 : vector<8x128xf32>
    %c0_6 = arith.constant 0 : index
    %c0_7 = arith.constant 0 : index
    %8 = vector.load %arg4[%c0_6, %c0_7] : memref<128x128xf32, #tpu.memory_space<vmem>>, vector<128x128xf32>
    %cst_8 = arith.constant dense<0.000000e+00> : vector<8x128xf32>
    %9 = tpu.matmul %7, %8, %cst_8 {dimension_numbers = #tpu.dot_dimension_numbers<[1], [0], [0], [1], [0, 0, 1, 1], [], []>} : vector<8x128xf32>, vector<128x128xf32>, vector<8x128xf32> -> vector<8x128xf32>
    %c0_9 = arith.constant 0 : index
    %c0_10 = arith.constant 0 : index
    %10 = vector.load %arg5[%c0_9, %c0_10] : memref<1x128xf32, #tpu.memory_space<vmem>>, vector<1x128xf32>
    %11 = vector.broadcast %10 : vector<1x128xf32> to vector<8x128xf32>
    %12 = arith.addf %9, %11 : vector<8x128xf32>
    %c0_11 = arith.constant 0 : index
    %c0_12 = arith.constant 0 : index
    %13 = vector.load %arg9[%c0_11, %c0_12] : memref<8x128xf32, #tpu.memory_space<vmem>>, vector<8x128xf32>
    tpu.vector_store %arg9[%c0_11, %c0_12], %12 {strides = array<i32>} : memref<8x128xf32, #tpu.memory_space<vmem>>, vector<8x128xf32>,
    %c0_13 = arith.constant 0 : index
    %c0_14 = arith.constant 0 : index
    %14 = vector.load %arg6[%c0_13, %c0_14] : memref<128x256xf32, #tpu.memory_space<vmem>>, vector<128x256xf32>
    %cst_15 = arith.constant dense<0.000000e+00> : vector<8x256xf32>
    %15 = tpu.matmul %7, %14, %cst_15 {dimension_numbers = #tpu.dot_dimension_numbers<[1], [0], [0], [1], [0, 0, 1, 1], [], []>} : vector<8x128xf32>, vector<128x256xf32>, vector<8x256xf32> -> vector<8x256xf32>
    %c0_16 = arith.constant 0 : index
    %c0_17 = arith.constant 0 : index
    %16 = vector.load %arg7[%c0_16, %c0_17] : memref<1x256xf32, #tpu.memory_space<vmem>>, vector<1x256xf32>
    %17 = vector.broadcast %16 : vector<1x256xf32> to vector<8x256xf32>
    %18 = arith.addf %15, %17 : vector<8x256xf32>
    %c0_18 = arith.constant 0 : index
    %c0_19 = arith.constant 0 : index
    %19 = vector.load %arg8[%c0_18, %c0_19] : memref<8x256xf32, #tpu.memory_space<vmem>>, vector<8x256xf32>
    tpu.vector_store %arg8[%c0_18, %c0_19], %18 {strides = array<i32>} : memref<8x256xf32, #tpu.memory_space<vmem>>, vector<8x256xf32>,
    return
  }
  func.func @transform_0(%arg0: i32) -> (i32, i32) {
    %c0_i32 = arith.constant 0 : i32
    %c0_i32_0 = arith.constant 0 : i32
    return %arg0, %c0_i32 : i32, i32
  }
  func.func @transform_1(%arg0: i32) -> (i32, i32) {
    %c0_i32 = arith.constant 0 : i32
    %c0_i32_0 = arith.constant 0 : i32
    %c0_i32_1 = arith.constant 0 : i32
    return %c0_i32, %c0_i32_0 : i32, i32
  }
  func.func @transform_2(%arg0: i32) -> (i32, i32) {
    %c0_i32 = arith.constant 0 : i32
    %c0_i32_0 = arith.constant 0 : i32
    %c0_i32_1 = arith.constant 0 : i32
    return %c0_i32, %c0_i32_0 : i32, i32
  }
  func.func @transform_3(%arg0: i32) -> (i32, i32) {
    %c0_i32 = arith.constant 0 : i32
    %c0_i32_0 = arith.constant 0 : i32
    %c0_i32_1 = arith.constant 0 : i32
    return %c0_i32, %c0_i32_0 : i32, i32
  }
  func.func @transform_4(%arg0: i32) -> (i32, i32) {
    %c0_i32 = arith.constant 0 : i32
    %c0_i32_0 = arith.constant 0 : i32
    %c0_i32_1 = arith.constant 0 : i32
    return %c0_i32, %c0_i32_0 : i32, i32
  }
  func.func @transform_5(%arg0: i32) -> (i32, i32) {
    %c0_i32 = arith.constant 0 : i32
    %c0_i32_0 = arith.constant 0 : i32
    %c0_i32_1 = arith.constant 0 : i32
    return %c0_i32, %c0_i32_0 : i32, i32
  }
  func.func @transform_6(%arg0: i32) -> (i32, i32) {
    %c0_i32 = arith.constant 0 : i32
    %c0_i32_0 = arith.constant 0 : i32
    %c0_i32_1 = arith.constant 0 : i32
    return %c0_i32, %c0_i32_0 : i32, i32
  }
  func.func @transform_7(%arg0: i32) -> (i32, i32) {
    %c0_i32 = arith.constant 0 : i32
    %c0_i32_0 = arith.constant 0 : i32
    return %arg0, %c0_i32 : i32, i32
  }
  func.func @transform_8(%arg0: i32) -> (i32, i32) {
    %c0_i32 = arith.constant 0 : i32
    %c0_i32_0 = arith.constant 0 : i32
    return %arg0, %c0_i32 : i32, i32
  }
}

</mosaic_0001>

<bundles_post_ra>
// kernel: tpu_custom_call.1
= control target key start
LH: loop header
LB: loop body
LE: loop exit
PB: predicated region body
PF: predicated region fallthrough
CT: control target
= control target key end

     0   :  { %14 = vsyncpa [#allocation3], 0  ;;  %s932_s0 = inlined_call_operand.hbm [shape: f32[8,128], index: 0, kind: input, shape index: {}]   ;;  %s933_s1 = inlined_call_operand.hbm [shape: f32[128,128], index: 1, kind: input, shape index: {}]   ;;  %s934_s2 = inlined_call_operand.vmem [shape: f32[1,128], index: 2, kind: input, shape index: {}]   ;;  %s935_s3 = inlined_call_operand.hbm [shape: f32[128,128], index: 3, kind: input, shape index: {}]   ;;  %s936_s4 = inlined_call_operand.vmem [shape: f32[1,128], index: 4, kind: input, shape index: {}]   ;;  %s937_s5 = inlined_call_operand.hbm [shape: f32[128,256], index: 5, kind: input, shape index: {}]   ;;  %s938_s6 = inlined_call_operand.vmem [shape: f32[1,256], index: 6, kind: input, shape index: {}]   ;;  %s939_s7 = inlined_call_operand.hbm [shape: f32[8,256], index: 7, kind: output, shape index: {0}]   ;;  %s940_s8 = inlined_call_operand.hbm [shape: f32[8,128], index: 8, kind: output, shape index: {1}]  }
   0x1   :  { %15 = vsyncpa [#allocation6], 0 }
   0x2   :  { %16 = vsyncpa [#allocation9], 0 }
   0x3   :  { %17 = vsyncpa [#allocation4], 0 }
   0x4   :  { %18 = vsyncpa [#allocation12], 0  ;;  %s761_s27 = smov [#allocation5]   ;;  %s619_s9 = scalar_lea.hbm %s933_s1, 2048 }
   0x5   :  { %s34_s28 = sshll.u32 %s761_s27, 4  ;;  %p620_p0 = scmp.ne.s32.totalorder %s933_s1, %s619_s9  ;;  %s35_s28 = int_to_ptr.vmem [resolvable:$true] %s34_s28 }
   0x6   :  { %p623_p1 = scmp.lt.u32.totalorder %s619_s9, %s933_s1 }
   0x8   :  { %p625_p2 = pnand %p623_p1, %p620_p0 }
   0xa   :  { %628 = shalt.err (!%p625_p2)
}
   0xb   :  { %s629_s14 = scalar_lea.vmem %s35_s28, 2048  ;;  %p634_p4 = scmp.lt.s32.totalorder %s35_s28, %s35_s28 }
   0xc   :  { %p630_p3 = scmp.ne.s32.totalorder %s35_s28, %s629_s14  ;;  %p635_p5 = scmp.lt.s32.totalorder %s629_s14, %s629_s14 }
   0xe   :  { %p636_p6 = por %p635_p5, %p634_p4 }
  0x10   :  { %p637_p7 = pnand %p636_p6, %p630_p3 }
  0x12   :  { %640 = shalt.err (!%p637_p7)
}
  0x13   :  { %s762_s15 = smov 128   ;;  %s763_s16 = smov 8  }
  0x14   :  { %40 = dma.hbm_to_vmem [thread:$0]  %s933_s1, 2048, %s35_s28, [#allocation6], %s762_s15, %s762_s15, %s763_s16  }
  0x15   :  { %s764_s19 = smov [#allocation2]   ;;  %s765_s21 = smov [#allocation7]  }
  0x16   :  { %s25_s20 = sshll.u32 %s764_s19, 4  ;;  %s48_s22 = sshll.u32 %s765_s21, 4  ;;  %s26_s20 = int_to_ptr.vmem [resolvable:$true] %s25_s20  ;;  %s49_s22 = int_to_ptr.vmem [resolvable:$true] %s48_s22 }
  0x17   :  { %s641_s25 = scalar_lea.hbm %s932_s0, 128 }
  0x18   :  { %p642_p8 = scmp.ne.s32.totalorder %s932_s0, %s641_s25  ;;  %p645_p9 = scmp.lt.u32.totalorder %s641_s25, %s932_s0 }
  0x1a   :  { %p647_p10 = pnand %p645_p9, %p642_p8 }
  0x1c   :  { %650 = shalt.err (!%p647_p10)
}
  0x1d   :  { %s651_s1 = scalar_lea.vmem %s26_s20, 128  ;;  %p656_p12 = scmp.lt.s32.totalorder %s26_s20, %s26_s20 }
  0x1e   :  { %p652_p11 = scmp.ne.s32.totalorder %s26_s20, %s651_s1  ;;  %p657_p13 = scmp.lt.s32.totalorder %s651_s1, %s651_s1 }
  0x20   :  { %p658_p0 = por %p657_p13, %p656_p12 }
  0x22   :  { %p659_p1 = pnand %p658_p0, %p652_p11 }
  0x24   :  { %662 = shalt.err (!%p659_p1)
}
  0x25   :  { %28 = dma.hbm_to_vmem [thread:$0]  %s932_s0, 128, %s26_s20, [#allocation3]  }
  0x26   :  { %s663_s12 = scalar_lea.hbm %s935_s3, 2048 }
  0x27   :  { %p664_p2 = scmp.ne.s32.totalorder %s935_s3, %s663_s12  ;;  %p667_p3 = scmp.lt.u32.totalorder %s663_s12, %s935_s3 }
  0x29   :  { %p669_p4 = pnand %p667_p3, %p664_p2 }
  0x2b   :  { %672 = shalt.err (!%p669_p4)
}
  0x2c   :  { %s673_s19 = scalar_lea.vmem %s49_s22, 2048  ;;  %p678_p6 = scmp.lt.s32.totalorder %s49_s22, %s49_s22 }
  0x2d   :  { %p674_p5 = scmp.ne.s32.totalorder %s49_s22, %s673_s19  ;;  %p679_p7 = scmp.lt.s32.totalorder %s673_s19, %s673_s19 }
  0x2f   :  { %p680_p8 = por %p679_p7, %p678_p6 }
  0x31   :  { %p681_p9 = pnand %p680_p8, %p674_p5 }
  0x33   :  { %684 = shalt.err (!%p681_p9)
}
  0x34   :  { %54 = dma.hbm_to_vmem [thread:$0]  %s935_s3, 2048, %s49_s22, [#allocation6], %s762_s15, %s762_s15, %s763_s16  }
  0x35   :  { %s766_s21 = smov [#allocation8]   ;;  %s685_s26 = scalar_lea.hbm %s937_s5, 4096 }
  0x36   :  { %s62_s23 = sshll.u32 %s766_s21, 4  ;;  %p686_p10 = scmp.ne.s32.totalorder %s937_s5, %s685_s26  ;;  %s63_s23 = int_to_ptr.vmem [resolvable:$true] %s62_s23 }
  0x37   :  { %p689_p11 = scmp.lt.u32.totalorder %s685_s26, %s937_s5 }
  0x39   :  { %p691_p12 = pnand %p689_p11, %p686_p10 }
  0x3b   :  { %694 = shalt.err (!%p691_p12)
}
  0x3c   :  { %s695_s28 = scalar_lea.vmem %s63_s23, 4096  ;;  %p700_p0 = scmp.lt.s32.totalorder %s63_s23, %s63_s23 }
  0x3d   :  { %p696_p13 = scmp.ne.s32.totalorder %s63_s23, %s695_s28  ;;  %p701_p1 = scmp.lt.s32.totalorder %s695_s28, %s695_s28 }
  0x3f   :  { %p702_p2 = por %p701_p1, %p700_p0 }
  0x41   :  { %p703_p3 = pnand %p702_p2, %p696_p13 }
  0x43   :  { %706 = shalt.err (!%p703_p3)
}
  0x44   :  { %s767_s3 = smov 256   ;;  %s768_s15 = smov 16  }
  0x45   :  { %68 = dma.hbm_to_vmem [thread:$0]  %s937_s5, 4096, %s63_s23, [#allocation9], %s767_s3, %s767_s3, %s768_s15  }
  0x46   :  { %751 = dma.done.wait [#allocation3], 128  }
  0x47   :  { %752 = vsyncadd [#allocation3], 4294967168 }
  0x48   :  { %753 = dma.done.wait [#allocation6], 4096  }
  0x49   :  { %754 = vsyncadd [#allocation6], 4294963200 }
  0x4a   :  { %755 = dma.done.wait [#allocation9], 4096  }
  0x4b   :  { %756 = vsyncadd [#allocation9], 4294963200  ;;  %v769_v0 = vmov 0.0|0.0   ;;  %vm770_vm0 = vmmov 0   ;;  %v771_v1 = vmov 0.0   ;;  %v84_v2 = vld [vmem:[#allocation5] sm:$0xff] }
  0x4c   :  { %526 = vmatprep.subr.bf16.mxu0 %v769_v0  ;;  %488 = vmatprep.mubr.msk.f32.mxu0 %vm770_vm0, %v771_v1  ;;  %v85_v3 = vld [vmem:[#allocation5 + $0x8] sm:$0xff]  ;;  %v86_v4 = vld [vmem:[#allocation5 + $0x10] sm:$0xff]  ;;  %v87_v6 = vld [vmem:[#allocation5 + $0x18] sm:$0xff]  ;;  %s773_s17 = smov [#allocation10]  }
  0x4d   :  { %550 = vmatprep.subr.bf16.mxu1 %v769_v0  ;;  %523 = vmatprep.mubr.msk.f32.mxu1 %vm770_vm0, %v771_v1  ;;  %v527_v5 = vpack.c.bf16 %v85_v3, %v84_v2  ;;  %v530_v7 = vpack.c.bf16 %v87_v6, %v86_v4  ;;  %v88_v8 = vld [vmem:[#allocation5 + $0x20] sm:$0xff]  ;;  %v89_v9 = vld [vmem:[#allocation5 + $0x28] sm:$0xff]  ;;  %v90_v13 = vld [vmem:[#allocation5 + $0x30] sm:$0xff]  ;;  %s395_s18 = sshll.u32 %s773_s17, 4  ;;  %s901_s18 = int_to_ptr.vmem [resolvable:$true] %s395_s18 }
  0x4e   :  { %v178_v10 = vld [vmem:[#allocation7] sm:$0xff]  ;;  %v179_v11 = vld [vmem:[#allocation7 + $0x8] sm:$0xff]  ;;  %v533_v12 = vpack.c.bf16 %v89_v9, %v88_v8  ;;  %v91_v15 = vld [vmem:[#allocation5 + $0x38] sm:$0xff] }
  0x4f   :  { %528 = vmatpush3.bf16.msra.mxu0 %v527_v5  ;;  %v551_v14 = vpack.c.bf16 %v179_v11, %v178_v10  ;;  %v180_v16 = vld [vmem:[#allocation7 + $0x10] sm:$0xff]  ;;  %v181_v17 = vld [vmem:[#allocation7 + $0x18] sm:$0xff]  ;;  %v182_v19 = vld [vmem:[#allocation7 + $0x20] sm:$0xff]  ;;  %v536_v21 = vpack.c.bf16 %v91_v15, %v90_v13 }
  0x50   :  { %529 = vmatprep.subr.bf16.mxu0 %v769_v0  ;;  %v554_v18 = vpack.c.bf16 %v181_v17, %v180_v16  ;;  %v183_v20 = vld [vmem:[#allocation7 + $0x28] sm:$0xff]  ;;  %v92_v22 = vld [vmem:[#allocation5 + $0x40] sm:$0xff]  ;;  %v184_v25 = vld [vmem:[#allocation7 + $0x30] sm:$0xff] }
  0x51   :  { %552 = vmatpush3.bf16.msra.mxu1 %v551_v14  ;;  %v93_v23 = vld [vmem:[#allocation5 + $0x48] sm:$0xff]  ;;  %v557_v24 = vpack.c.bf16 %v183_v20, %v182_v19  ;;  %v185_v26 = vld [vmem:[#allocation7 + $0x38] sm:$0xff]  ;;  %v94_v28 = vld [vmem:[#allocation5 + $0x50] sm:$0xff] }
  0x52   :  { %553 = vmatprep.subr.bf16.mxu1 %v769_v0  ;;  %v539_v27 = vpack.c.bf16 %v93_v23, %v92_v22  ;;  %v95_v29 = vld [vmem:[#allocation5 + $0x58] sm:$0xff]  ;;  %v560_v30 = vpack.c.bf16 %v185_v26, %v184_v25  ;;  %v186_v31 = vld [vmem:[#allocation7 + $0x40] sm:$0xff]  ;;  %v187_v32 = vld [vmem:[#allocation7 + $0x48] sm:$0xff] }
  0x53   :  { %531 = vmatpush3.bf16.msra.mxu0 %v530_v7  ;;  %v542_v33 = vpack.c.bf16 %v95_v29, %v94_v28  ;;  %v96_v34 = vld [vmem:[#allocation5 + $0x60] sm:$0xff]  ;;  %v97_v35 = vld [vmem:[#allocation5 + $0x68] sm:$0xff]  ;;  %v563_v36 = vpack.c.bf16 %v187_v32, %v186_v31  ;;  %v188_v37 = vld [vmem:[#allocation7 + $0x50] sm:$0xff] }
  0x54   :  { %532 = vmatprep.subr.bf16.mxu0 %v769_v0  ;;  %v189_v38 = vld [vmem:[#allocation7 + $0x58] sm:$0xff]  ;;  %v545_v39 = vpack.c.bf16 %v97_v35, %v96_v34  ;;  %v98_v40 = vld [vmem:[#allocation5 + $0x70] sm:$0xff]  ;;  %v273_v42 = vld [vmem:[#allocation8 + $0x8] sm:$0xff] }
  0x55   :  { %555 = vmatpush3.bf16.msra.mxu1 %v554_v18  ;;  %v99_v41 = vld [vmem:[#allocation5 + $0x78] sm:$0xff]  ;;  %v566_v44 = vpack.c.bf16 %v189_v38, %v188_v37  ;;  %v190_v45 = vld [vmem:[#allocation7 + $0x60] sm:$0xff]  ;;  %v191_v46 = vld [vmem:[#allocation7 + $0x68] sm:$0xff] }
  0x56   :  { %556 = vmatprep.subr.bf16.mxu1 %v769_v0  ;;  %v275_v43 = vld [vmem:[#allocation8 + $0x18] sm:$0xff]  ;;  %v548_v47 = vpack.c.bf16 %v99_v41, %v98_v40  ;;  %v272_v49 = vld [vmem:[#allocation8] sm:$0xff]  ;;  %v274_v50 = vld [vmem:[#allocation8 + $0x10] sm:$0xff]  ;;  %v569_v53 = vpack.c.bf16 %v191_v46, %v190_v45  ;;  %v306_v40 = vlaneseq }
  0x57   :  { %534 = vmatpush3.bf16.msra.mxu0 %v533_v12  ;;  %v574_v48 = vpack.c.bf16 %v275_v43, %v273_v42  ;;  %v277_v51 = vld [vmem:[#allocation8 + $0x28] sm:$0xff]  ;;  %v279_v52 = vld [vmem:[#allocation8 + $0x38] sm:$0xff]  ;;  %v576_v55 = vpack.c.bf16 %v274_v50, %v272_v49  ;;  %v276_v57 = vld [vmem:[#allocation8 + $0x20] sm:$0xff] }
  0x58   :  { %535 = vmatprep.subr.bf16.mxu0 %v769_v0  ;;  %v83_v54 = vld [vmem:[#allocation2] sm:$0xff]  ;;  %v578_v56 = vpack.c.bf16 %v279_v52, %v277_v51  ;;  %v278_v58 = vld [vmem:[#allocation8 + $0x30] sm:$0xff]  ;;  %v281_v59 = vld [vmem:[#allocation8 + $0x48] sm:$0xff]  ;;  %v307_v41 = vshrl.u32 %v306_v40, 7 }
  0x59   :  { %558 = vmatpush3.bf16.msra.mxu1 %v557_v24  ;;  %v283_v60 = vld [vmem:[#allocation8 + $0x58] sm:$0xff]  ;;  %v580_v61 = vpack.c.bf16 %v278_v58, %v276_v57  ;;  %v280_v63 = vld [vmem:[#allocation8 + $0x40] sm:$0xff]  ;;  %v282_v2 = vld [vmem:[#allocation8 + $0x50] sm:$0xff] }
  0x5a   :  { %559 = vmatprep.subr.bf16.mxu1 %v769_v0  ;;  %v582_v62 = vpack.c.bf16 %v283_v60, %v281_v59  ;;  %v285_v3 = vld [vmem:[#allocation8 + $0x68] sm:$0xff]  ;;  %v287_v4 = vld [vmem:[#allocation8 + $0x78] sm:$0xff]  ;;  %v584_v5 = vpack.c.bf16 %v282_v2, %v280_v63  ;;  %v284_v7 = vld [vmem:[#allocation8 + $0x60] sm:$0xff]  ;;  %v308_v42 = vsub.s32 0, %v307_v41 }
  0x5b   :  { %537 = vmatpush3.bf16.msra.mxu0 %v536_v21  ;;  %v586_v6 = vpack.c.bf16 %v287_v4, %v285_v3  ;;  %v286_v8 = vld [vmem:[#allocation8 + $0x70] sm:$0xff]  ;;  %v289_v9 = vld [vmem:[#allocation8 + $0x88] sm:$0xff]  ;;  %v291_v10 = vld [vmem:[#allocation8 + $0x98] sm:$0xff] }
  0x5c   :  { %538 = vmatprep.subr.bf16.mxu0 %v769_v0  ;;  %v590_v11 = vpack.c.bf16 %v291_v10, %v289_v9  ;;  %v288_v12 = vld [vmem:[#allocation8 + $0x80] sm:$0xff]  ;;  %v293_v13 = vld [vmem:[#allocation8 + $0xa8] sm:$0xff]  ;;  %v295_v14 = vld [vmem:[#allocation8 + $0xb8] sm:$0xff] }
  0x5d   :  { %561 = vmatpush3.bf16.msra.mxu1 %v560_v30  ;;  %v594_v16 = vpack.c.bf16 %v295_v14, %v293_v13  ;;  %v292_v17 = vld [vmem:[#allocation8 + $0xa0] sm:$0xff]  ;;  %v294_v18 = vld [vmem:[#allocation8 + $0xb0] sm:$0xff]  ;;  %v297_v19 = vld [vmem:[#allocation8 + $0xc8] sm:$0xff] }
  0x5e   :  { %562 = vmatprep.subr.bf16.mxu1 %v769_v0  ;;  %v299_v20 = vld [vmem:[#allocation8 + $0xd8] sm:$0xff]  ;;  %v596_v21 = vpack.c.bf16 %v294_v18, %v292_v17  ;;  %v296_v23 = vld [vmem:[#allocation8 + $0xc0] sm:$0xff]  ;;  %v298_v24 = vld [vmem:[#allocation8 + $0xd0] sm:$0xff] }
  0x5f   :  { %540 = vmatpush3.bf16.msra.mxu0 %v539_v27  ;;  %v598_v22 = vpack.c.bf16 %v299_v20, %v297_v19  ;;  %v600_v25 = vpack.c.bf16 %v298_v24, %v296_v23  ;;  %v301_v26 = vld [vmem:[#allocation8 + $0xe8] sm:$0xff]  ;;  %v303_v27 = vld [vmem:[#allocation8 + $0xf8] sm:$0xff]  ;;  %v192_v29 = vld [vmem:[#allocation7 + $0x70] sm:$0xff] }
  0x60   :  { %541 = vmatprep.subr.bf16.mxu0 %v769_v0  ;;  %v602_v28 = vpack.c.bf16 %v303_v27, %v301_v26  ;;  %v193_v30 = vld [vmem:[#allocation7 + $0x78] sm:$0xff]  ;;  %v300_v31 = vld [vmem:[#allocation8 + $0xe0] sm:$0xff] }
  0x61   :  { %564 = vmatpush3.bf16.msra.mxu1 %v563_v36  ;;  %v572_v32 = vpack.c.bf16 %v193_v30, %v192_v29  ;;  %v420_v35 = vld [vmem:[%s934_s2] ss:$0 sm:$0xff]  ;;  %s772_s2 = smov [#allocation11]  }
  0x62   :  { %565 = vmatprep.subr.bf16.mxu1 %v769_v0  ;;  %v304_v43 = vld [vmem:[%s938_s6] sm:$0x3]  ;;  %s405_s14 = sshll.u32 %s772_s2, 4  ;;  %s406_s14 = int_to_ptr.vmem [resolvable:$true] %s405_s14 }
  0x63   :  { %543 = vmatpush3.bf16.msra.mxu0 %v542_v33  ;;  %v302_v33 = vld [vmem:[#allocation8 + $0xf0] sm:$0xff]  ;;  %v309_v45 = vrot.slane %v304_v43, %v308_v42  ;;  %v421_v46 = vld [vmem:[%s936_s4] ss:$0 sm:$0xff]  ;;  %s707_s6 = scalar_lea.vmem %s406_s14, 128  ;;  %p712_p5 = scmp.lt.s32.totalorder %s406_s14, %s406_s14 }
  0x64   :  { %544 = vmatprep.subr.bf16.mxu0 %v769_v0  ;;  %v604_v34 = vpack.c.bf16 %v302_v33, %v300_v31  ;;  %p708_p4 = scmp.ne.s32.totalorder %s406_s14, %s707_s6  ;;  %p713_p6 = scmp.lt.s32.totalorder %s707_s6, %s707_s6 }
  0x65   :  { %567 = vmatpush3.bf16.msra.mxu1 %v566_v44  ;;  %v312_v44 = vsub.s32 1, %v307_v41 }
  0x66   :  { %568 = vmatprep.subr.bf16.mxu1 %v769_v0  ;;  %p714_p7 = por %p713_p6, %p712_p5 }
  0x67   :  { %546 = vmatpush3.bf16.msra.mxu0 %v545_v39 }
  0x68   :  { %547 = vmatprep.subr.bf16.mxu0 %v769_v0  ;;  %p715_p8 = pnand %p714_p7, %p708_p4 }
  0x69   :  { %570 = vmatpush3.bf16.msra.mxu1 %v569_v53 }
  0x6a   :  { %571 = vmatprep.subr.bf16.mxu1 %v769_v0  ;;  %v588_v0 = vpack.c.bf16 %v286_v8, %v284_v7 }
  0x6b   :  { %549 = vmatpush3.bf16.msra.mxu0 %v548_v47  ;;  %v313_v47 = vrot.slane %v304_v43, %v312_v44 }
  0x6c   :  { %575 = vmatprep.subr.bf16.mxu0 %v574_v48 }
  0x6d   :  { %573 = vmatpush3.bf16.msra.mxu1 %v572_v32 }
  0x6e   :  { %489 = vmatmul.mubr.f32.vlgmr.msra.gmra.mrb[0].mxu0 %v83_v54 }
  0x6f   :  { %577 = vmatpush1.bf16.msra.mxu0 %v576_v55  ;;  %380 = vmatprep.mubr.f32.mxu0 %v771_v1  ;;  %v290_v1 = vld [vmem:[#allocation8 + $0x90] sm:$0xff] }
  0x70   :  { %579 = vmatprep.subr.bf16.mxu0 %v578_v56  ;;  %v592_v15 = vpack.c.bf16 %v290_v1, %v288_v12 }
  0x73   :  { %581 = vmatpush1.bf16.msra.mxu0 %v580_v61 }
  0x74   :  { %583 = vmatprep.subr.bf16.mxu0 %v582_v62 }
  0x77   :  { %585 = vmatpush1.bf16.msra.mxu0 %v584_v5 }
  0x78   :  { %587 = vmatprep.subr.bf16.mxu0 %v586_v6 }
  0x7b   :  { %589 = vmatpush1.bf16.msra.mxu0 %v588_v0 }
  0x7c   :  { %591 = vmatprep.subr.bf16.mxu0 %v590_v11 }
  0x7f   :  { %593 = vmatpush1.bf16.msra.mxu0 %v592_v15 }
  0x80   :  { %595 = vmatprep.subr.bf16.mxu0 %v594_v16 }
  0x83   :  { %597 = vmatpush1.bf16.msra.mxu0 %v596_v21 }
  0x84   :  { %599 = vmatprep.subr.bf16.mxu0 %v598_v22 }
  0x87   :  { %601 = vmatpush1.bf16.msra.mxu0 %v600_v25 }
  0x88   :  { %603 = vmatprep.subr.bf16.mxu0 %v602_v28 }
  0x8b   :  { %605 = vmatpush1.bf16.msra.mxu0 %v604_v34 }
 0x141   :  { %v173_v36 = vpop.f32.mrb[0].mxu0 }
 0x142   :  { %v174_v37 = vadd.f32 %v420_v35, %v173_v36  ;;  %v490_v38 = vpop.f32.mrb[1].mxu0 }
 0x144   :  { %v177_v39 = vmax.f32 %v174_v37, 0.0 }
 0x146   :  { %524 = vmatmul.mubr.f32.vlgmr.msra.gmra.mrb[0].mxu1 %v177_v39  ;;  %381 = vmatmul.mubr.f32.vlgmr.msra.gmra.mrb[2].mxu0 %v177_v39 }
 0x219   :  { %v267_v48 = vpop.f32.mrb[0].mxu1  ;;  %v382_v49 = vpop.f32.mrb[2].mxu0 }
 0x21a   :  { %v268_v50 = vadd.f32 %v421_v46, %v267_v48  ;;  %v383_v51 = vadd.f32 %v382_v49, %v309_v45  ;;  %v525_v52 = vpop.f32.mrb[1].mxu1  ;;  %v384_v53 = vpop.f32.mrb[3].mxu0 }
 0x21b   :  { %v385_v54 = vadd.f32 %v384_v53, %v313_v47 }
 0x21c   :  { %271 = vst [vmem:[#allocation11] sm:$0xff] %v268_v50  ;;  %387 = vst [vmem:[#allocation10] sm:$0xff] %v383_v51 }
 0x21d   :  { %388 = vst [vmem:[#allocation10 + $0x8] sm:$0xff] %v385_v54 }
 0x21e   :  { %718 = shalt.err (!%p715_p8)
}
 0x21f   :  { %s719_s0 = scalar_lea.hbm %s940_s8, 128 }
 0x220   :  { %p720_p9 = scmp.ne.s32.totalorder %s940_s8, %s719_s0  ;;  %p723_p10 = scmp.lt.u32.totalorder %s719_s0, %s940_s8 }
 0x222   :  { %p725_p11 = pnand %p723_p10, %p720_p9 }
 0x224   :  { %728 = shalt.err (!%p725_p11)
}
 0x225   :  { %408 = dma.vmem_to_hbm [thread:$0]  %s406_s14, 128, %s940_s8, [#allocation12]  }
 0x226   :  { %s729_s27 = scalar_lea.vmem %s901_s18, 256  ;;  %p734_p13 = scmp.lt.s32.totalorder %s901_s18, %s901_s18 }
 0x227   :  { %p730_p12 = scmp.ne.s32.totalorder %s901_s18, %s729_s27  ;;  %p735_p0 = scmp.lt.s32.totalorder %s729_s27, %s729_s27 }
 0x229   :  { %p736_p1 = por %p735_p0, %p734_p13 }
 0x22b   :  { %p737_p2 = pnand %p736_p1, %p730_p12 }
 0x22d   :  { %740 = shalt.err (!%p737_p2)
}
 0x22e   :  { %s741_s1 = scalar_lea.hbm %s939_s7, 256 }
 0x22f   :  { %p742_p3 = scmp.ne.s32.totalorder %s939_s7, %s741_s1  ;;  %p745_p4 = scmp.lt.u32.totalorder %s741_s1, %s939_s7 }
 0x231   :  { %p747_p5 = pnand %p745_p4, %p742_p3 }
 0x233   :  { %750 = shalt.err (!%p747_p5)
}
 0x234   :  { %398 = dma.vmem_to_hbm [thread:$0]  %s901_s18, 256, %s939_s7, [#allocation4]  }
 0x235   :  { %757 = dma.done.wait [#allocation4], 256  }
 0x236   :  { %758 = vsyncadd [#allocation4], 4294967040 }
 0x237   :  { %759 = dma.done.wait [#allocation12], 128  }
 0x238   :  { %760 = vsyncadd [#allocation12], 4294967168 }
 0x239   :  { %415 = vsyncpa [#allocation3], 1 }
 0x23a   :  { %416 = vsyncpa [#allocation6], 1 }
 0x23b   :  { %417 = vsyncpa [#allocation9], 1 }
 0x23c   :  { %418 = vsyncpa [#allocation4], 1 }
 0x23d   :  { %419 = vsyncpa [#allocation12], 1 }

// kernel: tpu_custom_call.1
= control target key start
LH: loop header
LB: loop body
LE: loop exit
PB: predicated region body
PF: predicated region fallthrough
CT: control target
= control target key end

     0   :  { %14 = vsyncpa [#allocation3], 0  ;;  %s932_s0 = inlined_call_operand.hbm [shape: f32[8,128], index: 0, kind: input, shape index: {}]   ;;  %s933_s1 = inlined_call_operand.hbm [shape: f32[128,128], index: 1, kind: input, shape index: {}]   ;;  %s934_s2 = inlined_call_operand.vmem [shape: f32[1,128], index: 2, kind: input, shape index: {}]   ;;  %s935_s3 = inlined_call_operand.hbm [shape: f32[128,128], index: 3, kind: input, shape index: {}]   ;;  %s936_s4 = inlined_call_operand.vmem [shape: f32[1,128], index: 4, kind: input, shape index: {}]   ;;  %s937_s5 = inlined_call_operand.hbm [shape: f32[128,256], index: 5, kind: input, shape index: {}]   ;;  %s938_s6 = inlined_call_operand.vmem [shape: f32[1,256], index: 6, kind: input, shape index: {}]   ;;  %s939_s7 = inlined_call_operand.hbm [shape: f32[8,256], index: 7, kind: output, shape index: {0}]   ;;  %s940_s8 = inlined_call_operand.hbm [shape: f32[8,128], index: 8, kind: output, shape index: {1}]  }
   0x1   :  { %15 = vsyncpa [#allocation6], 0 }
   0x2   :  { %16 = vsyncpa [#allocation9], 0 }
   0x3   :  { %17 = vsyncpa [#allocation4], 0 }
   0x4   :  { %18 = vsyncpa [#allocation12], 0  ;;  %s761_s27 = smov [#allocation5]   ;;  %s619_s9 = scalar_lea.hbm %s933_s1, 2048 }
   0x5   :  { %s34_s28 = sshll.u32 %s761_s27, 4  ;;  %p620_p0 = scmp.ne.s32.totalorder %s933_s1, %s619_s9  ;;  %s35_s28 = int_to_ptr.vmem [resolvable:$true] %s34_s28 }
   0x6   :  { %p623_p1 = scmp.lt.u32.totalorder %s619_s9, %s933_s1 }
   0x8   :  { %p625_p2 = pnand %p623_p1, %p620_p0 }
   0xa   :  { %628 = shalt.err (!%p625_p2)
}
   0xb   :  { %s629_s14 = scalar_lea.vmem %s35_s28, 2048  ;;  %p634_p4 = scmp.lt.s32.totalorder %s35_s28, %s35_s28 }
   0xc   :  { %p630_p3 = scmp.ne.s32.totalorder %s35_s28, %s629_s14  ;;  %p635_p5 = scmp.lt.s32.totalorder %s629_s14, %s629_s14 }
   0xe   :  { %p636_p6 = por %p635_p5, %p634_p4 }
  0x10   :  { %p637_p7 = pnand %p636_p6, %p630_p3 }
  0x12   :  { %640 = shalt.err (!%p637_p7)
}
  0x13   :  { %s762_s15 = smov 128   ;;  %s763_s16 = smov 8  }
  0x14   :  { %40 = dma.hbm_to_vmem [thread:$0]  %s933_s1, 2048, %s35_s28, [#allocation6], %s762_s15, %s762_s15, %s763_s16  }
  0x15   :  { %s764_s19 = smov [#allocation2]   ;;  %s765_s21 = smov [#allocation7]  }
  0x16   :  { %s25_s20 = sshll.u32 %s764_s19, 4  ;;  %s48_s22 = sshll.u32 %s765_s21, 4  ;;  %s26_s20 = int_to_ptr.vmem [resolvable:$true] %s25_s20  ;;  %s49_s22 = int_to_ptr.vmem [resolvable:$true] %s48_s22 }
  0x17   :  { %s641_s25 = scalar_lea.hbm %s932_s0, 128 }
  0x18   :  { %p642_p8 = scmp.ne.s32.totalorder %s932_s0, %s641_s25  ;;  %p645_p9 = scmp.lt.u32.totalorder %s641_s25, %s932_s0 }
  0x1a   :  { %p647_p10 = pnand %p645_p9, %p642_p8 }
  0x1c   :  { %650 = shalt.err (!%p647_p10)
}
  0x1d   :  { %s651_s1 = scalar_lea.vmem %s26_s20, 128  ;;  %p656_p12 = scmp.lt.s32.totalorder %s26_s20, %s26_s20 }
  0x1e   :  { %p652_p11 = scmp.ne.s32.totalorder %s26_s20, %s651_s1  ;;  %p657_p13 = scmp.lt.s32.totalorder %s651_s1, %s651_s1 }
  0x20   :  { %p658_p0 = por %p657_p13, %p656_p12 }
  0x22   :  { %p659_p1 = pnand %p658_p0, %p652_p11 }
  0x24   :  { %662 = shalt.err (!%p659_p1)
}
  0x25   :  { %28 = dma.hbm_to_vmem [thread:$0]  %s932_s0, 128, %s26_s20, [#allocation3]  }
  0x26   :  { %s663_s12 = scalar_lea.hbm %s935_s3, 2048 }
  0x27   :  { %p664_p2 = scmp.ne.s32.totalorder %s935_s3, %s663_s12  ;;  %p667_p3 = scmp.lt.u32.totalorder %s663_s12, %s935_s3 }
  0x29   :  { %p669_p4 = pnand %p667_p3, %p664_p2 }
  0x2b   :  { %672 = shalt.err (!%p669_p4)
}
  0x2c   :  { %s673_s19 = scalar_lea.vmem %s49_s22, 2048  ;;  %p678_p6 = scmp.lt.s32.totalorder %s49_s22, %s49_s22 }
  0x2d   :  { %p674_p5 = scmp.ne.s32.totalorder %s49_s22, %s673_s19  ;;  %p679_p7 = scmp.lt.s32.totalorder %s673_s19, %s673_s19 }
  0x2f   :  { %p680_p8 = por %p679_p7, %p678_p6 }
  0x31   :  { %p681_p9 = pnand %p680_p8, %p674_p5 }
  0x33   :  { %684 = shalt.err (!%p681_p9)
}
  0x34   :  { %54 = dma.hbm_to_vmem [thread:$0]  %s935_s3, 2048, %s49_s22, [#allocation6], %s762_s15, %s762_s15, %s763_s16  }
  0x35   :  { %s766_s21 = smov [#allocation8]   ;;  %s685_s26 = scalar_lea.hbm %s937_s5, 4096 }
  0x36   :  { %s62_s23 = sshll.u32 %s766_s21, 4  ;;  %p686_p10 = scmp.ne.s32.totalorder %s937_s5, %s685_s26  ;;  %s63_s23 = int_to_ptr.vmem [resolvable:$true] %s62_s23 }
  0x37   :  { %p689_p11 = scmp.lt.u32.totalorder %s685_s26, %s937_s5 }
  0x39   :  { %p691_p12 = pnand %p689_p11, %p686_p10 }
  0x3b   :  { %694 = shalt.err (!%p691_p12)
}
  0x3c   :  { %s695_s28 = scalar_lea.vmem %s63_s23, 4096  ;;  %p700_p0 = scmp.lt.s32.totalorder %s63_s23, %s63_s23 }
  0x3d   :  { %p696_p13 = scmp.ne.s32.totalorder %s63_s23, %s695_s28  ;;  %p701_p1 = scmp.lt.s32.totalorder %s695_s28, %s695_s28 }
  0x3f   :  { %p702_p2 = por %p701_p1, %p700_p0 }
  0x41   :  { %p703_p3 = pnand %p702_p2, %p696_p13 }
  0x43   :  { %706 = shalt.err (!%p703_p3)
}
  0x44   :  { %s767_s3 = smov 256   ;;  %s768_s15 = smov 16  }
  0x45   :  { %68 = dma.hbm_to_vmem [thread:$0]  %s937_s5, 4096, %s63_s23, [#allocation9], %s767_s3, %s767_s3, %s768_s15  }
  0x46   :  { %751 = dma.done.wait [#allocation3], 128  }
  0x47   :  { %752 = vsyncadd [#allocation3], 4294967168 }
  0x48   :  { %753 = dma.done.wait [#allocation6], 4096  }
  0x49   :  { %754 = vsyncadd [#allocation6], 4294963200 }
  0x4a   :  { %755 = dma.done.wait [#allocation9], 4096  }
  0x4b   :  { %756 = vsyncadd [#allocation9], 4294963200  ;;  %v769_v0 = vmov 0.0|0.0   ;;  %vm770_vm0 = vmmov 0   ;;  %v771_v1 = vmov 0.0   ;;  %v84_v2 = vld [vmem:[#allocation5] sm:$0xff] }
  0x4c   :  { %526 = vmatprep.subr.bf16.mxu0 %v769_v0  ;;  %488 = vmatprep.mubr.msk.f32.mxu0 %vm770_vm0, %v771_v1  ;;  %v85_v3 = vld [vmem:[#allocation5 + $0x8] sm:$0xff]  ;;  %v86_v4 = vld [vmem:[#allocation5 + $0x10] sm:$0xff]  ;;  %v87_v6 = vld [vmem:[#allocation5 + $0x18] sm:$0xff]  ;;  %s773_s17 = smov [#allocation10]  }
  0x4d   :  { %550 = vmatprep.subr.bf16.mxu1 %v769_v0  ;;  %523 = vmatprep.mubr.msk.f32.mxu1 %vm770_vm0, %v771_v1  ;;  %v527_v5 = vpack.c.bf16 %v85_v3, %v84_v2  ;;  %v530_v7 = vpack.c.bf16 %v87_v6, %v86_v4  ;;  %v88_v8 = vld [vmem:[#allocation5 + $0x20] sm:$0xff]  ;;  %v89_v9 = vld [vmem:[#allocation5 + $0x28] sm:$0xff]  ;;  %v90_v13 = vld [vmem:[#allocation5 + $0x30] sm:$0xff]  ;;  %s395_s18 = sshll.u32 %s773_s17, 4  ;;  %s901_s18 = int_to_ptr.vmem [resolvable:$true] %s395_s18 }
  0x4e   :  { %v178_v10 = vld [vmem:[#allocation7] sm:$0xff]  ;;  %v179_v11 = vld [vmem:[#allocation7 + $0x8] sm:$0xff]  ;;  %v533_v12 = vpack.c.bf16 %v89_v9, %v88_v8  ;;  %v91_v15 = vld [vmem:[#allocation5 + $0x38] sm:$0xff] }
  0x4f   :  { %528 = vmatpush3.bf16.msra.mxu0 %v527_v5  ;;  %v551_v14 = vpack.c.bf16 %v179_v11, %v178_v10  ;;  %v180_v16 = vld [vmem:[#allocation7 + $0x10] sm:$0xff]  ;;  %v181_v17 = vld [vmem:[#allocation7 + $0x18] sm:$0xff]  ;;  %v182_v19 = vld [vmem:[#allocation7 + $0x20] sm:$0xff]  ;;  %v536_v21 = vpack.c.bf16 %v91_v15, %v90_v13 }
  0x50   :  { %529 = vmatprep.subr.bf16.mxu0 %v769_v0  ;;  %v554_v18 = vpack.c.bf16 %v181_v17, %v180_v16  ;;  %v183_v20 = vld [vmem:[#allocation7 + $0x28] sm:$0xff]  ;;  %v92_v22 = vld [vmem:[#allocation5 + $0x40] sm:$0xff]  ;;  %v184_v25 = vld [vmem:[#allocation7 + $0x30] sm:$0xff] }
  0x51   :  { %552 = vmatpush3.bf16.msra.mxu1 %v551_v14  ;;  %v93_v23 = vld [vmem:[#allocation5 + $0x48] sm:$0xff]  ;;  %v557_v24 = vpack.c.bf16 %v183_v20, %v182_v19  ;;  %v185_v26 = vld [vmem:[#allocation7 + $0x38] sm:$0xff]  ;;  %v94_v28 = vld [vmem:[#allocation5 + $0x50] sm:$0xff] }
  0x52   :  { %553 = vmatprep.subr.bf16.mxu1 %v769_v0  ;;  %v539_v27 = vpack.c.bf16 %v93_v23, %v92_v22  ;;  %v95_v29 = vld [vmem:[#allocation5 + $0x58] sm:$0xff]  ;;  %v560_v30 = vpack.c.bf16 %v185_v26, %v184_v25  ;;  %v186_v31 = vld [vmem:[#allocation7 + $0x40] sm:$0xff]  ;;  %v187_v32 = vld [vmem:[#allocation7 + $0x48] sm:$0xff] }
  0x53   :  { %531 = vmatpush3.bf16.msra.mxu0 %v530_v7  ;;  %v542_v33 = vpack.c.bf16 %v95_v29, %v94_v28  ;;  %v96_v34 = vld [vmem:[#allocation5 + $0x60] sm:$0xff]  ;;  %v97_v35 = vld [vmem:[#allocation5 + $0x68] sm:$0xff]  ;;  %v563_v36 = vpack.c.bf16 %v187_v32, %v186_v31  ;;  %v188_v37 = vld [vmem:[#allocation7 + $0x50] sm:$0xff] }
  0x54   :  { %532 = vmatprep.subr.bf16.mxu0 %v769_v0  ;;  %v189_v38 = vld [vmem:[#allocation7 + $0x58] sm:$0xff]  ;;  %v545_v39 = vpack.c.bf16 %v97_v35, %v96_v34  ;;  %v98_v40 = vld [vmem:[#allocation5 + $0x70] sm:$0xff]  ;;  %v273_v42 = vld [vmem:[#allocation8 + $0x8] sm:$0xff] }
  0x55   :  { %555 = vmatpush3.bf16.msra.mxu1 %v554_v18  ;;  %v99_v41 = vld [vmem:[#allocation5 + $0x78] sm:$0xff]  ;;  %v566_v44 = vpack.c.bf16 %v189_v38, %v188_v37  ;;  %v190_v45 = vld [vmem:[#allocation7 + $0x60] sm:$0xff]  ;;  %v191_v46 = vld [vmem:[#allocation7 + $0x68] sm:$0xff] }
  0x56   :  { %556 = vmatprep.subr.bf16.mxu1 %v769_v0  ;;  %v275_v43 = vld [vmem:[#allocation8 + $0x18] sm:$0xff]  ;;  %v548_v47 = vpack.c.bf16 %v99_v41, %v98_v40  ;;  %v272_v49 = vld [vmem:[#allocation8] sm:$0xff]  ;;  %v274_v50 = vld [vmem:[#allocation8 + $0x10] sm:$0xff]  ;;  %v569_v53 = vpack.c.bf16 %v191_v46, %v190_v45  ;;  %v306_v40 = vlaneseq }
  0x57   :  { %534 = vmatpush3.bf16.msra.mxu0 %v533_v12  ;;  %v574_v48 = vpack.c.bf16 %v275_v43, %v273_v42  ;;  %v277_v51 = vld [vmem:[#allocation8 + $0x28] sm:$0xff]  ;;  %v279_v52 = vld [vmem:[#allocation8 + $0x38] sm:$0xff]  ;;  %v576_v55 = vpack.c.bf16 %v274_v50, %v272_v49  ;;  %v276_v57 = vld [vmem:[#allocation8 + $0x20] sm:$0xff] }
  0x58   :  { %535 = vmatprep.subr.bf16.mxu0 %v769_v0  ;;  %v83_v54 = vld [vmem:[#allocation2] sm:$0xff]  ;;  %v578_v56 = vpack.c.bf16 %v279_v52, %v277_v51  ;;  %v278_v58 = vld [vmem:[#allocation8 + $0x30] sm:$0xff]  ;;  %v281_v59 = vld [vmem:[#allocation8 + $0x48] sm:$0xff]  ;;  %v307_v41 = vshrl.u32 %v306_v40, 7 }
  0x59   :  { %558 = vmatpush3.bf16.msra.mxu1 %v557_v24  ;;  %v283_v60 = vld [vmem:[#allocation8 + $0x58] sm:$0xff]  ;;  %v580_v61 = vpack.c.bf16 %v278_v58, %v276_v57  ;;  %v280_v63 = vld [vmem:[#allocation8 + $0x40] sm:$0xff]  ;;  %v282_v2 = vld [vmem:[#allocation8 + $0x50] sm:$0xff] }
  0x5a   :  { %559 = vmatprep.subr.bf16.mxu1 %v769_v0  ;;  %v582_v62 = vpack.c.bf16 %v283_v60, %v281_v59  ;;  %v285_v3 = vld [vmem:[#allocation8 + $0x68] sm:$0xff]  ;;  %v287_v4 = vld [vmem:[#allocation8 + $0x78] sm:$0xff]  ;;  %v584_v5 = vpack.c.bf16 %v282_v2, %v280_v63  ;;  %v284_v7 = vld [vmem:[#allocation8 + $0x60] sm:$0xff]  ;;  %v308_v42 = vsub.s32 0, %v307_v41 }
  0x5b   :  { %537 = vmatpush3.bf16.msra.mxu0 %v536_v21  ;;  %v586_v6 = vpack.c.bf16 %v287_v4, %v285_v3  ;;  %v286_v8 = vld [vmem:[#allocation8 + $0x70] sm:$0xff]  ;;  %v289_v9 = vld [vmem:[#allocation8 + $0x88] sm:$0xff]  ;;  %v291_v10 = vld [vmem:[#allocation8 + $0x98] sm:$0xff] }
  0x5c   :  { %538 = vmatprep.subr.bf16.mxu0 %v769_v0  ;;  %v590_v11 = vpack.c.bf16 %v291_v10, %v289_v9  ;;  %v288_v12 = vld [vmem:[#allocation8 + $0x80] sm:$0xff]  ;;  %v293_v13 = vld [vmem:[#allocation8 + $0xa8] sm:$0xff]  ;;  %v295_v14 = vld [vmem:[#allocation8 + $0xb8] sm:$0xff] }
  0x5d   :  { %561 = vmatpush3.bf16.msra.mxu1 %v560_v30  ;;  %v594_v16 = vpack.c.bf16 %v295_v14, %v293_v13  ;;  %v292_v17 = vld [vmem:[#allocation8 + $0xa0] sm:$0xff]  ;;  %v294_v18 = vld [vmem:[#allocation8 + $0xb0] sm:$0xff]  ;;  %v297_v19 = vld [vmem:[#allocation8 + $0xc8] sm:$0xff] }
  0x5e   :  { %562 = vmatprep.subr.bf16.mxu1 %v769_v0  ;;  %v299_v20 = vld [vmem:[#allocation8 + $0xd8] sm:$0xff]  ;;  %v596_v21 = vpack.c.bf16 %v294_v18, %v292_v17  ;;  %v296_v23 = vld [vmem:[#allocation8 + $0xc0] sm:$0xff]  ;;  %v298_v24 = vld [vmem:[#allocation8 + $0xd0] sm:$0xff] }
  0x5f   :  { %540 = vmatpush3.bf16.msra.mxu0 %v539_v27  ;;  %v598_v22 = vpack.c.bf16 %v299_v20, %v297_v19  ;;  %v600_v25 = vpack.c.bf16 %v298_v24, %v296_v23  ;;  %v301_v26 = vld [vmem:[#allocation8 + $0xe8] sm:$0xff]  ;;  %v303_v27 = vld [vmem:[#allocation8 + $0xf8] sm:$0xff]  ;;  %v192_v29 = vld [vmem:[#allocation7 + $0x70] sm:$0xff] }
  0x60   :  { %541 = vmatprep.subr.bf16.mxu0 %v769_v0  ;;  %v602_v28 = vpack.c.bf16 %v303_v27, %v301_v26  ;;  %v193_v30 = vld [vmem:[#allocation7 + $0x78] sm:$0xff]  ;;  %v300_v31 = vld [vmem:[#allocation8 + $0xe0] sm:$0xff] }
  0x61   :  { %564 = vmatpush3.bf16.msra.mxu1 %v563_v36  ;;  %v572_v32 = vpack.c.bf16 %v193_v30, %v192_v29  ;;  %v420_v35 = vld [vmem:[%s934_s2] ss:$0 sm:$0xff]  ;;  %s772_s2 = smov [#allocation11]  }
  0x62   :  { %565 = vmatprep.subr.bf16.mxu1 %v769_v0  ;;  %v304_v43 = vld [vmem:[%s938_s6] sm:$0x3]  ;;  %s405_s14 = sshll.u32 %s772_s2, 4  ;;  %s406_s14 = int_to_ptr.vmem [resolvable:$true] %s405_s14 }
  0x63   :  { %543 = vmatpush3.bf16.msra.mxu0 %v542_v33  ;;  %v302_v33 = vld [vmem:[#allocation8 + $0xf0] sm:$0xff]  ;;  %v309_v45 = vrot.slane %v304_v43, %v308_v42  ;;  %v421_v46 = vld [vmem:[%s936_s4] ss:$0 sm:$0xff]  ;;  %s707_s6 = scalar_lea.vmem %s406_s14, 128  ;;  %p712_p5 = scmp.lt.s32.totalorder %s406_s14, %s406_s14 }
  0x64   :  { %544 = vmatprep.subr.bf16.mxu0 %v769_v0  ;;  %v604_v34 = vpack.c.bf16 %v302_v33, %v300_v31  ;;  %p708_p4 = scmp.ne.s32.totalorder %s406_s14, %s707_s6  ;;  %p713_p6 = scmp.lt.s32.totalorder %s707_s6, %s707_s6 }
  0x65   :  { %567 = vmatpush3.bf16.msra.mxu1 %v566_v44  ;;  %v312_v44 = vsub.s32 1, %v307_v41 }
  0x66   :  { %568 = vmatprep.subr.bf16.mxu1 %v769_v0  ;;  %p714_p7 = por %p713_p6, %p712_p5 }
  0x67   :  { %546 = vmatpush3.bf16.msra.mxu0 %v545_v39 }
  0x68   :  { %547 = vmatprep.subr.bf16.mxu0 %v769_v0  ;;  %p715_p8 = pnand %p714_p7, %p708_p4 }
  0x69   :  { %570 = vmatpush3.bf16.msra.mxu1 %v569_v53 }
  0x6a   :  { %571 = vmatprep.subr.bf16.mxu1 %v769_v0  ;;  %v588_v0 = vpack.c.bf16 %v286_v8, %v284_v7 }
  0x6b   :  { %549 = vmatpush3.bf16.msra.mxu0 %v548_v47  ;;  %v313_v47 = vrot.slane %v304_v43, %v312_v44 }
  0x6c   :  { %575 = vmatprep.subr.bf16.mxu0 %v574_v48 }
  0x6d   :  { %573 = vmatpush3.bf16.msra.mxu1 %v572_v32 }
  0x6e   :  { %489 = vmatmul.mubr.f32.vlgmr.msra.gmra.mrb[0].mxu0 %v83_v54 }
  0x6f   :  { %577 = vmatpush1.bf16.msra.mxu0 %v576_v55  ;;  %380 = vmatprep.mubr.f32.mxu0 %v771_v1  ;;  %v290_v1 = vld [vmem:[#allocation8 + $0x90] sm:$0xff] }
  0x70   :  { %579 = vmatprep.subr.bf16.mxu0 %v578_v56  ;;  %v592_v15 = vpack.c.bf16 %v290_v1, %v288_v12 }
  0x73   :  { %581 = vmatpush1.bf16.msra.mxu0 %v580_v61 }
  0x74   :  { %583 = vmatprep.subr.bf16.mxu0 %v582_v62 }
  0x77   :  { %585 = vmatpush1.bf16.msra.mxu0 %v584_v5 }
  0x78   :  { %587 = vmatprep.subr.bf16.mxu0 %v586_v6 }
  0x7b   :  { %589 = vmatpush1.bf16.msra.mxu0 %v588_v0 }
  0x7c   :  { %591 = vmatprep.subr.bf16.mxu0 %v590_v11 }
  0x7f   :  { %593 = vmatpush1.bf16.msra.mxu0 %v592_v15 }
  0x80   :  { %595 = vmatprep.subr.bf16.mxu0 %v594_v16 }
  0x83   :  { %597 = vmatpush1.bf16.msra.mxu0 %v596_v21 }
  0x84   :  { %599 = vmatprep.subr.bf16.mxu0 %v598_v22 }
  0x87   :  { %601 = vmatpush1.bf16.msra.mxu0 %v600_v25 }
  0x88   :  { %603 = vmatprep.subr.bf16.mxu0 %v602_v28 }
  0x8b   :  { %605 = vmatpush1.bf16.msra.mxu0 %v604_v34 }
 0x141   :  { %v173_v36 = vpop.f32.mrb[0].mxu0 }
 0x142   :  { %v174_v37 = vadd.f32 %v420_v35, %v173_v36  ;;  %v490_v38 = vpop.f32.mrb[1].mxu0 }
 0x144   :  { %v177_v39 = vmax.f32 %v174_v37, 0.0 }
 0x146   :  { %524 = vmatmul.mubr.f32.vlgmr.msra.gmra.mrb[0].mxu1 %v177_v39  ;;  %381 = vmatmul.mubr.f32.vlgmr.msra.gmra.mrb[2].mxu0 %v177_v39 }
 0x219   :  { %v267_v48 = vpop.f32.mrb[0].mxu1  ;;  %v382_v49 = vpop.f32.mrb[2].mxu0 }
 0x21a   :  { %v268_v50 = vadd.f32 %v421_v46, %v267_v48  ;;  %v383_v51 = vadd.f32 %v382_v49, %v309_v45  ;;  %v525_v52 = vpop.f32.mrb[1].mxu1  ;;  %v384_v53 = vpop.f32.mrb[3].mxu0 }
 0x21b   :  { %v385_v54 = vadd.f32 %v384_v53, %v313_v47 }
 0x21c   :  { %271 = vst [vmem:[#allocation11] sm:$0xff] %v268_v50  ;;  %387 = vst [vmem:[#allocation10] sm:$0xff] %v383_v51 }
 0x21d   :  { %388 = vst [vmem:[#allocation10 + $0x8] sm:$0xff] %v385_v54 }
 0x21e   :  { %718 = shalt.err (!%p715_p8)
}
 0x21f   :  { %s719_s0 = scalar_lea.hbm %s940_s8, 128 }
 0x220   :  { %p720_p9 = scmp.ne.s32.totalorder %s940_s8, %s719_s0  ;;  %p723_p10 = scmp.lt.u32.totalorder %s719_s0, %s940_s8 }
 0x222   :  { %p725_p11 = pnand %p723_p10, %p720_p9 }
 0x224   :  { %728 = shalt.err (!%p725_p11)
}
 0x225   :  { %408 = dma.vmem_to_hbm [thread:$0]  %s406_s14, 128, %s940_s8, [#allocation12]  }
 0x226   :  { %s729_s27 = scalar_lea.vmem %s901_s18, 256  ;;  %p734_p13 = scmp.lt.s32.totalorder %s901_s18, %s901_s18 }
 0x227   :  { %p730_p12 = scmp.ne.s32.totalorder %s901_s18, %s729_s27  ;;  %p735_p0 = scmp.lt.s32.totalorder %s729_s27, %s729_s27 }
 0x229   :  { %p736_p1 = por %p735_p0, %p734_p13 }
 0x22b   :  { %p737_p2 = pnand %p736_p1, %p730_p12 }
 0x22d   :  { %740 = shalt.err (!%p737_p2)
}
 0x22e   :  { %s741_s1 = scalar_lea.hbm %s939_s7, 256 }
 0x22f   :  { %p742_p3 = scmp.ne.s32.totalorder %s939_s7, %s741_s1  ;;  %p745_p4 = scmp.lt.u32.totalorder %s741_s1, %s939_s7 }
 0x231   :  { %p747_p5 = pnand %p745_p4, %p742_p3 }
 0x233   :  { %750 = shalt.err (!%p747_p5)
}
 0x234   :  { %398 = dma.vmem_to_hbm [thread:$0]  %s901_s18, 256, %s939_s7, [#allocation4]  }
 0x235   :  { %757 = dma.done.wait [#allocation4], 256  }
 0x236   :  { %758 = vsyncadd [#allocation4], 4294967040 }
 0x237   :  { %759 = dma.done.wait [#allocation12], 128  }
 0x238   :  { %760 = vsyncadd [#allocation12], 4294967168 }
 0x239   :  { %415 = vsyncpa [#allocation3], 1 }
 0x23a   :  { %416 = vsyncpa [#allocation6], 1 }
 0x23b   :  { %417 = vsyncpa [#allocation9], 1 }
 0x23c   :  { %418 = vsyncpa [#allocation4], 1 }
 0x23d   :  { %419 = vsyncpa [#allocation12], 1 }

</bundles_post_ra>
